<compile_context>
chip_gen: v5e
topology: v5e:2x2
jax: 0.10.0
libtpu: 0.0.40
codegen_flags: <defaults>
</compile_context>

<pallas_src>
import jax
import jax.numpy as jnp
from jax.experimental import pallas as pl
from jax.experimental.pallas import tpu as pltpu


def _round_up(x, m):
    return (x + m - 1) // m * m


# ---------------------------------------------------------------------------
# Fused GNN + head-projection kernel.
#   grid = (row tiles of A, contraction tiles of A)
#   acc  = A_bin_tile @ XW_scaled          (f32 accumulator in VMEM)
#   finalize (k == last):
#     g   = sigmoid(d_inv_sqrt_row * acc + b)        # g_emb rows, VMEM only
#     s_o = sum(g * w_o, lanes)   s_d = sum(g * w_d, lanes)
#   Only the per-node scalars s_o, s_d are written to HBM.
# ---------------------------------------------------------------------------
def _make_gnn_head_kernel(tk, resident_xw):
    def kernel(a_ref, xw_ref, dscale_ref, b_ref, wo_ref, wd_ref,
               so_ref, sd_ref, acc_ref):
        k = pl.program_id(1)

        @pl.when(k == 0)
        def _init():
            acc_ref[...] = jnp.zeros_like(acc_ref)

        if resident_xw:
            # XW is one VMEM-resident block; slice the k-th contraction chunk.
            start = pl.multiple_of(k * tk, tk)
            xw_blk = xw_ref[pl.ds(start, tk), :]
        else:
            xw_blk = xw_ref[...]

        acc_ref[...] += jnp.dot(a_ref[...], xw_blk,
                                preferred_element_type=jnp.float32)

        @pl.when(k == pl.num_programs(1) - 1)
        def _finalize():
            # Row scaling by D^-1/2 completes the symmetric normalization.
            g = jax.nn.sigmoid(acc_ref[...] * dscale_ref[...] + b_ref[...])
            so_ref[...] = jnp.sum(g * wo_ref[...], axis=1, keepdims=True)
            sd_ref[...] = jnp.sum(g * wd_ref[...], axis=1, keepdims=True)

    return kernel


# ---------------------------------------------------------------------------
# One-time per-graph preprocessing (cache across forward calls): pad the
# binary adjacency to tile boundaries, cast to bf16 (0/1 is exact), and
# compute D^-1/2.  Doing this per call roughly doubled HBM traffic.
# ---------------------------------------------------------------------------
def prepare_graph(a_adj, tm_target=1024, tk_target=2048):
    n = a_adj.shape[0]
    tm = min(tm_target, _round_up(n, 8))      # sublane dim of A tile
    tk = min(tk_target, _round_up(n, 128))    # lane dim of A tile
    n_rows = _round_up(n, tm)
    n_cols = _round_up(n, tk)

    a_p = jnp.zeros((n_rows, n_cols), jnp.bfloat16).at[:n, :n].set(
        a_adj.astype(jnp.bfloat16))           # binary -> exact in bf16

    deg = jnp.sum(a_adj, axis=1)
    d_inv_sqrt = jnp.where(deg > 0, 1.0 / jnp.sqrt(deg), 0.0)
    dscale = jnp.zeros((n_rows, 1), jnp.float32).at[:n, 0].set(d_inv_sqrt)

    return dict(a_p=a_p, dscale=dscale, d_inv_sqrt=d_inv_sqrt,
                n=n, tm=tm, tk=tk, n_rows=n_rows, n_cols=n_cols)


def gnn_head_forward(graph, xw_p, b_pad, wo, wd):
    tm, tk = graph["tm"], graph["tk"]
    n_rows, n_cols = graph["n_rows"], graph["n_cols"]
    emb_pad = xw_p.shape[1]

    # Keep XW VMEM-resident only while it stays well under the v7x budget
    # (64 MiB physical VMEM); otherwise stream per-k tiles (big tm already
    # limits the re-fetch overhead).
    resident_xw = (n_cols * emb_pad * 2) <= (16 << 20)
    if resident_xw:
        xw_spec = pl.BlockSpec((n_cols, emb_pad), lambda i, k: (0, 0))
    else:
        xw_spec = pl.BlockSpec((tk, emb_pad), lambda i, k: (k, 0))

    grid = (n_rows // tm, n_cols // tk)

    xw_rows = n_cols if resident_xw else tk
    vmem_est = (2 * tm * tk * 2              # A tiles, bf16, double-buffered
                + 2 * xw_rows * emb_pad * 2  # XW (worst case 2 buffers)
                + tm * emb_pad * 4           # f32 accumulator scratch
                + 8 * tm * 4                 # dscale + scalar outputs
                + 8 * emb_pad * 4)           # bias / w_o / w_d rows
    vmem_limit = int(min(max(vmem_est + (8 << 20), 32 << 20), 48 << 20))

    so, sd = pl.pallas_call(
        _make_gnn_head_kernel(tk, resident_xw),
        out_shape=(jax.ShapeDtypeStruct((n_rows, 1), jnp.float32),
                   jax.ShapeDtypeStruct((n_rows, 1), jnp.float32)),
        grid_spec=pltpu.PrefetchScalarGridSpec(
            num_scalar_prefetch=0,
            grid=grid,
            in_specs=[
                pl.BlockSpec((tm, tk), lambda i, k: (i, k)),      # A tile
                xw_spec,                                          # XW
                pl.BlockSpec((tm, 1), lambda i, k: (i, 0)),       # D^-1/2 rows
                pl.BlockSpec((1, emb_pad), lambda i, k: (0, 0)),  # bias row
                pl.BlockSpec((1, emb_pad), lambda i, k: (0, 0)),  # w_o row
                pl.BlockSpec((1, emb_pad), lambda i, k: (0, 0)),  # w_d row
            ],
            out_specs=[
                pl.BlockSpec((tm, 1), lambda i, k: (i, 0)),       # s_o
                pl.BlockSpec((tm, 1), lambda i, k: (i, 0)),       # s_d
            ],
            scratch_shapes=[pltpu.VMEM((tm, emb_pad), jnp.float32)],
        ),
        compiler_params=pltpu.CompilerParams(
            dimension_semantics=("parallel", "arbitrary"),
            vmem_limit_bytes=vmem_limit),
    )(graph["a_p"], xw_p, graph["dscale"], b_pad, wo, wd)
    return so, sd


# ---------------------------------------------------------------------------
# Full forward.  graph = prepare_graph(binary adjacency with self loops).
# ---------------------------------------------------------------------------
def one_gnn_for_onehour_forward(graph, x, dis, train_idx, params):
    n = graph["n"]
    f = x.shape[1]
    emb = params["w_gnn"].shape[1]
    emb_pad = _round_up(emb, 128)

    # Hoisted X @ W (tiny), pre-scaled by D^-1/2 (column side of the symmetric
    # normalization), padded to lane-dense embedding width, cast to bf16.
    w_pad = jnp.zeros((f, emb_pad), jnp.float32).at[:, :emb].set(params["w_gnn"])
    b_pad = jnp.zeros((1, emb_pad), jnp.float32).at[:, :emb].set(params["b_gnn"])
    xw = graph["d_inv_sqrt"][:, None] * (x @ w_pad)                 # [N, EMB_PAD]
    xw_p = jnp.zeros((graph["n_cols"], emb_pad), jnp.bfloat16).at[:n, :].set(
        xw.astype(jnp.bfloat16))

    # Decompose the output Linear; the concat is never materialized.
    w_out, b_out = params["w_out"], params["b_out"]
    wo = jnp.zeros((1, emb_pad), jnp.float32).at[0, :emb].set(w_out[:emb, 0])
    wd = jnp.zeros((1, emb_pad), jnp.float32).at[0, :emb].set(w_out[emb:2 * emb, 0])
    w_dis = w_out[2 * emb, 0]

    # Fused GNN + per-node scalar head projections (Pallas).
    s_o_nodes, s_d_nodes = gnn_head_forward(graph, xw_p, b_pad, wo, wd)

    # Data-dependent scalar gathers + tiny elementwise tanh stay in XLA.
    # (Indices must be < N; padded rows of s_*_nodes are never read.)
    o_idx, d_idx = train_idx
    z = dis[o_idx, d_idx] * w_dis + b_out[0, 0]                     # [E]
    pre = jnp.tanh(s_o_nodes[o_idx, 0] + s_d_nodes[d_idx, 0] + z)
    return pre.reshape(-1, 1)                                       # [E, 1]


if __name__ == "__main__":
    # Small synthetic shapes consistent with the module.
    N = 16          # number of graph nodes
    F = 8           # input node-feature dim
    EMB = 8         # config['node_embsize']
    E = 8           # number of (origin, destination) training pairs

    key = jax.random.PRNGKey(0)
    k_x, k_a, k_dis, k_w1, k_b1, k_w2, k_b2, k_idx = jax.random.split(key, 8)

    # Node features.
    x = jax.random.normal(k_x, (N, F), dtype=jnp.float32)

    # Random symmetric BINARY adjacency with self loops (this is the graph g).
    a_raw = (jax.random.uniform(k_a, (N, N)) > 0.7).astype(jnp.float32)
    a_adj = jnp.minimum(jnp.maximum(a_raw, a_raw.T) + jnp.eye(N, dtype=jnp.float32), 1.0)

    # Pairwise distance matrix and training index pairs (tuple of index arrays,
    # matching PyTorch advanced indexing dis[train_idx]).
    dis = jax.random.uniform(k_dis, (N, N), dtype=jnp.float32)
    idx = jax.random.randint(k_idx, (2, E), 0, N)
    train_idx = (idx[0], idx[1])

    # Deterministic parameters (shapes implied by the module's __init__).
    params = {
        "w_gnn": 0.1 * jax.random.normal(k_w1, (F, EMB), dtype=jnp.float32),
        "b_gnn": 0.1 * jax.random.normal(k_b1, (1, EMB), dtype=jnp.float32),
        "w_out": 0.1 * jax.random.normal(k_w2, (2 * EMB + 1, 1), dtype=jnp.float32),
        "b_out": 0.1 * jax.random.normal(k_b2, (1, 1), dtype=jnp.float32),
    }

    # One-time graph preprocessing (cached across forward calls).
    graph = prepare_graph(a_adj)

    pre = one_gnn_for_onehour_forward(graph, x, dis, train_idx, params)
    pre = jax.block_until_ready(pre)
    assert pre.shape == (E, 1) and pre.dtype == jnp.float32

    # Pure-JAX f32 reference (symmetric-normalized adjacency).  Kernel uses an
    # exact 0/1 bf16 adjacency with external degree scaling and bf16 XW, so the
    # only precision loss is the bf16 cast of XW.
    deg = jnp.sum(a_adj, axis=1)
    d_inv_sqrt = 1.0 / jnp.sqrt(deg)
    a_norm = a_adj * d_inv_sqrt[:, None] * d_inv_sqrt[None, :]
    g_emb_ref = jax.nn.sigmoid(a_norm @ (x @ params["w_gnn"]) + params["b_gnn"])
    emb_ref = jnp.concatenate(
        (g_emb_ref[train_idx[0]], g_emb_ref[train_idx[1]],
         dis[train_idx[0], train_idx[1]].reshape(-1, 1)), axis=1)
    pre_ref = jnp.tanh(emb_ref @ params["w_out"] + params["b_out"])
    assert jnp.allclose(pre, pre_ref, atol=1e-2, rtol=1e-2), "mismatch vs reference"

    print("KERNEL_OK")
</pallas_src>

<mosaic_0001>
module attributes {stable_mosaic.version = 11 : i64} {
  func.func @kernel(%arg0: i32, %arg1: i32, %arg2: memref<16x128xbf16, #tpu.memory_space<vmem>>, %arg3: memref<128x128xbf16, #tpu.memory_space<vmem>>, %arg4: memref<16x1xf32, #tpu.memory_space<vmem>>, %arg5: memref<1x128xf32, #tpu.memory_space<vmem>>, %arg6: memref<1x128xf32, #tpu.memory_space<vmem>>, %arg7: memref<1x128xf32, #tpu.memory_space<vmem>>, %arg8: memref<16x1xf32, #tpu.memory_space<vmem>>, %arg9: memref<16x1xf32, #tpu.memory_space<vmem>>, %arg10: memref<16x128xf32, #tpu.memory_space<vmem>>) attributes {dimension_semantics = [#tpu.dimension_semantics<parallel>, #tpu.dimension_semantics<arbitrary>], iteration_bounds = array<i64: 1, 1>, scalar_prefetch = 0 : i64, scratch_operands = 1 : i64, tpu.core_type = #tpu.core_type<tc>, window_params = [{transform_indices = @transform_0, window_bounds = array<i64: 16, 128>}, {pipeline_mode = #tpu.pipeline_mode<synchronous>, transform_indices = @transform_1, window_bounds = array<i64: 128, 128>}, {transform_indices = @transform_2, window_bounds = array<i64: 16, 1>}, {pipeline_mode = #tpu.pipeline_mode<synchronous>, transform_indices = @transform_3, window_bounds = array<i64: 1, 128>}, {pipeline_mode = #tpu.pipeline_mode<synchronous>, transform_indices = @transform_4, window_bounds = array<i64: 1, 128>}, {pipeline_mode = #tpu.pipeline_mode<synchronous>, transform_indices = @transform_5, window_bounds = array<i64: 1, 128>}, {transform_indices = @transform_6, window_bounds = array<i64: 16, 1>}, {transform_indices = @transform_7, window_bounds = array<i64: 16, 1>}]} {
    %c0_i32 = arith.constant 0 : i32
    %0 = arith.cmpi eq, %arg1, %c0_i32 : i32
    %1 = arith.extui %0 : i1 to i32
    %c0_i32_0 = arith.constant 0 : i32
    %2 = arith.cmpi ne, %1, %c0_i32_0 : i32
    scf.if %2 {
      %cst_9 = arith.constant 0.000000e+00 : f32
      %15 = vector.broadcast %cst_9 : f32 to vector<16x128xf32>
      %c0_10 = arith.constant 0 : index
      %c0_11 = arith.constant 0 : index
      %16 = vector.load %arg10[%c0_10, %c0_11] : memref<16x128xf32, #tpu.memory_space<vmem>>, vector<16x128xf32>
      tpu.vector_store %arg10[%c0_10, %c0_11], %15 {strides = array<i32>} : memref<16x128xf32, #tpu.memory_space<vmem>>, vector<16x128xf32>,
    } else {
    }
    %c128_i32 = arith.constant 128 : i32
    %3 = arith.muli %arg1, %c128_i32 : i32
    %4 = tpu.assume_multiple %3, 128 : i32
    %5 = arith.index_cast %4 : i32 to index
    %c0 = arith.constant 0 : index
    %6 = vector.load %arg3[%5, %c0] : memref<128x128xbf16, #tpu.memory_space<vmem>>, vector<128x128xbf16>
    %c0_1 = arith.constant 0 : index
    %c0_2 = arith.constant 0 : index
    %7 = vector.load %arg10[%c0_1, %c0_2] : memref<16x128xf32, #tpu.memory_space<vmem>>, vector<16x128xf32>
    %c0_3 = arith.constant 0 : index
    %c0_4 = arith.constant 0 : index
    %8 = vector.load %arg2[%c0_3, %c0_4] : memref<16x128xbf16, #tpu.memory_space<vmem>>, vector<16x128xbf16>
    %cst = arith.constant dense<0.000000e+00> : vector<16x128xf32>
    %9 = tpu.matmul %8, %6, %cst {dimension_numbers = #tpu.dot_dimension_numbers<[1], [0], [0], [1], [0, 0, 1, 1], [], []>} : vector<16x128xbf16>, vector<128x128xbf16>, vector<16x128xf32> -> vector<16x128xf32>
    %10 = arith.addf %7, %9 : vector<16x128xf32>
    %c0_5 = arith.constant 0 : index
    %c0_6 = arith.constant 0 : index
    %11 = vector.load %arg10[%c0_5, %c0_6] : memref<16x128xf32, #tpu.memory_space<vmem>>, vector<16x128xf32>
    tpu.vector_store %arg10[%c0_5, %c0_6], %10 {strides = array<i32>} : memref<16x128xf32, #tpu.memory_space<vmem>>, vector<16x128xf32>,
    %c0_i32_7 = arith.constant 0 : i32
    %12 = arith.cmpi eq, %arg1, %c0_i32_7 : i32
    %13 = arith.extui %12 : i1 to i32
    %c0_i32_8 = arith.constant 0 : i32
    %14 = arith.cmpi ne, %13, %c0_i32_8 : i32
    scf.if %14 {
      %c0_9 = arith.constant 0 : index
      %c0_10 = arith.constant 0 : index
      %15 = vector.load %arg10[%c0_9, %c0_10] : memref<16x128xf32, #tpu.memory_space<vmem>>, vector<16x128xf32>
      %c0_11 = arith.constant 0 : index
      %c0_12 = arith.constant 0 : index
      %16 = vector.load %arg4[%c0_11, %c0_12] : memref<16x1xf32, #tpu.memory_space<vmem>>, vector<16x1xf32>
      %17 = vector.broadcast %16 : vector<16x1xf32> to vector<16x128xf32>
      %18 = arith.mulf %15, %17 : vector<16x128xf32>
      %c0_13 = arith.constant 0 : index
      %c0_14 = arith.constant 0 : index
      %19 = vector.load %arg5[%c0_13, %c0_14] : memref<1x128xf32, #tpu.memory_space<vmem>>, vector<1x128xf32>
      %20 = vector.broadcast %19 : vector<1x128xf32> to vector<16x128xf32>
      %21 = arith.addf %18, %20 : vector<16x128xf32>
      %22 = arith.negf %21 : vector<16x128xf32>
      %23 = math.exp %22 : vector<16x128xf32>
      %cst_15 = arith.constant 1.000000e+00 : f32
      %24 = vector.broadcast %cst_15 : f32 to vector<16x128xf32>
      %25 = arith.addf %24, %23 : vector<16x128xf32>
      %26 = arith.divf %24, %25 : vector<16x128xf32>
      %c0_16 = arith.constant 0 : index
      %c0_17 = arith.constant 0 : index
      %27 = vector.load %arg6[%c0_16, %c0_17] : memref<1x128xf32, #tpu.memory_space<vmem>>, vector<1x128xf32>
      %28 = vector.broadcast %27 : vector<1x128xf32> to vector<16x128xf32>
      %29 = arith.mulf %26, %28 : vector<16x128xf32>
      %cst_18 = arith.constant dense<0.000000e+00> : vector<16xf32>
      %30 = vector.multi_reduction <add>, %29, %cst_18 [1] : vector<16x128xf32> to vector<16xf32>
      %31 = vector.shape_cast %30 : vector<16xf32> to vector<16x1xf32>
      %c0_19 = arith.constant 0 : index
      %c0_20 = arith.constant 0 : index
      %32 = vector.load %arg8[%c0_19, %c0_20] : memref<16x1xf32, #tpu.memory_space<vmem>>, vector<16x1xf32>
      tpu.vector_store %arg8[%c0_19, %c0_20], %31 {strides = array<i32>} : memref<16x1xf32, #tpu.memory_space<vmem>>, vector<16x1xf32>,
      %c0_21 = arith.constant 0 : index
      %c0_22 = arith.constant 0 : index
      %33 = vector.load %arg7[%c0_21, %c0_22] : memref<1x128xf32, #tpu.memory_space<vmem>>, vector<1x128xf32>
      %34 = vector.broadcast %33 : vector<1x128xf32> to vector<16x128xf32>
      %35 = arith.mulf %26, %34 : vector<16x128xf32>
      %cst_23 = arith.constant dense<0.000000e+00> : vector<16xf32>
      %36 = vector.multi_reduction <add>, %35, %cst_23 [1] : vector<16x128xf32> to vector<16xf32>
      %37 = vector.shape_cast %36 : vector<16xf32> to vector<16x1xf32>
      %c0_24 = arith.constant 0 : index
      %c0_25 = arith.constant 0 : index
      %38 = vector.load %arg9[%c0_24, %c0_25] : memref<16x1xf32, #tpu.memory_space<vmem>>, vector<16x1xf32>
      tpu.vector_store %arg9[%c0_24, %c0_25], %37 {strides = array<i32>} : memref<16x1xf32, #tpu.memory_space<vmem>>, vector<16x1xf32>,
    } else {
    }
    return
  }
  func.func @transform_0(%arg0: i32, %arg1: i32) -> (i32, i32) {
    %c0_i32 = arith.constant 0 : i32
    return %arg0, %arg1 : i32, i32
  }
  func.func @transform_1(%arg0: i32, %arg1: i32) -> (i32, i32) {
    %c0_i32 = arith.constant 0 : i32
    %c0_i32_0 = arith.constant 0 : i32
    %c0_i32_1 = arith.constant 0 : i32
    return %c0_i32, %c0_i32_0 : i32, i32
  }
  func.func @transform_2(%arg0: i32, %arg1: i32) -> (i32, i32) {
    %c0_i32 = arith.constant 0 : i32
    %c0_i32_0 = arith.constant 0 : i32
    return %arg0, %c0_i32 : i32, i32
  }
  func.func @transform_3(%arg0: i32, %arg1: i32) -> (i32, i32) {
    %c0_i32 = arith.constant 0 : i32
    %c0_i32_0 = arith.constant 0 : i32
    %c0_i32_1 = arith.constant 0 : i32
    return %c0_i32, %c0_i32_0 : i32, i32
  }
  func.func @transform_4(%arg0: i32, %arg1: i32) -> (i32, i32) {
    %c0_i32 = arith.constant 0 : i32
    %c0_i32_0 = arith.constant 0 : i32
    %c0_i32_1 = arith.constant 0 : i32
    return %c0_i32, %c0_i32_0 : i32, i32
  }
  func.func @transform_5(%arg0: i32, %arg1: i32) -> (i32, i32) {
    %c0_i32 = arith.constant 0 : i32
    %c0_i32_0 = arith.constant 0 : i32
    %c0_i32_1 = arith.constant 0 : i32
    return %c0_i32, %c0_i32_0 : i32, i32
  }
  func.func @transform_6(%arg0: i32, %arg1: i32) -> (i32, i32) {
    %c0_i32 = arith.constant 0 : i32
    %c0_i32_0 = arith.constant 0 : i32
    return %arg0, %c0_i32 : i32, i32
  }
  func.func @transform_7(%arg0: i32, %arg1: i32) -> (i32, i32) {
    %c0_i32 = arith.constant 0 : i32
    %c0_i32_0 = arith.constant 0 : i32
    return %arg0, %c0_i32 : i32, i32
  }
}

</mosaic_0001>

<bundles_post_ra>
// kernel: tpu_custom_call.1
= control target key start
LH: loop header
LB: loop body
LE: loop exit
PB: predicated region body
PF: predicated region fallthrough
CT: control target
= control target key end

     0   :  { %13 = vsyncpa [#allocation4], 0  ;;  %s332_s27 = smov [#allocation3]   ;;  %s333_s29 = smov 64   ;;  %s409_s0 = inlined_call_operand.vmem [shape: bf16[16,128], index: 0, kind: input, shape index: {}]   ;;  %s410_s1 = inlined_call_operand.hbm [shape: bf16[128,128], index: 1, kind: input, shape index: {}]   ;;  %s411_s2 = inlined_call_operand.vmem [shape: f32[16,1], index: 2, kind: input, shape index: {}]   ;;  %s412_s3 = inlined_call_operand.vmem [shape: f32[1,128], index: 3, kind: input, shape index: {}]   ;;  %s413_s4 = inlined_call_operand.vmem [shape: f32[1,128], index: 4, kind: input, shape index: {}]   ;;  %s414_s5 = inlined_call_operand.vmem [shape: f32[1,128], index: 5, kind: input, shape index: {}]   ;;  %s415_s6 = inlined_call_operand.vmem [shape: f32[16,1], index: 6, kind: output, shape index: {0}]   ;;  %s416_s7 = inlined_call_operand.vmem [shape: f32[16,1], index: 7, kind: output, shape index: {1}]  }
   0x1   :  { %s20_s26 = sshll.u32 %s410_s1, 4  ;;  %s22_s28 = sshll.u32 %s332_s27, 4  ;;  %s21_s26 = int_to_ptr.hbm [resolvable:$true] %s20_s26  ;;  %s23_s28 = int_to_ptr.vmem [resolvable:$true] %s22_s28 }
   0x2   :  { %s334_s30 = smov 4  }
   0x3   :  { %28 = dma.hbm_to_vmem [thread:$0]  %s21_s26, 1024, %s23_s28, [#allocation4], %s333_s29, %s333_s29, %s334_s30  }
   0x4   :  { %330 = dma.done.wait [#allocation4], 1024  }
   0x5   :  { %331 = vsyncadd [#allocation4], 4294966272  ;;  %v288_v0 = vld [vmem:[#allocation3 + $0x38] sm:$0xff]  ;;  %v287_v1 = vld [vmem:[#allocation3 + $0x30] sm:$0xff]  ;;  %v335_v2 = vmov 0   ;;  %vm217_vm8 = vcmask 7168  }
   0x6   :  { %126 = vmatpush.bf16.msra.mxu0 %v288_v0  ;;  %294 = vset.pattern.permute.xlu0 %v335_v2  ;;  %v149_v3 = vld [vmem:[%s411_s2] sm:$0xff]  ;;  %v286_v4 = vld [vmem:[#allocation3 + $0x28] sm:$0xff]  ;;  %v284_v7 = vld [vmem:[#allocation3 + $0x18] sm:$0xff] }
   0x7   :  { %153 = vperm.xlu0 %294, %v149_v3   ;;  %v150_v5 = vld [vmem:[%s411_s2 + $0x8] sm:$0xff]  ;;  %v285_v6 = vld [vmem:[#allocation3 + $0x20] sm:$0xff]  ;;  %v283_v8 = vld [vmem:[#allocation3 + $0x10] sm:$0xff] }
   0x8   :  { %v282_v9 = vld [vmem:[#allocation3 + $0x8] sm:$0xff]  ;;  %v281_v10 = vld [vmem:[#allocation3] sm:$0xff] }
   0x9   :  { %v289_v11 = vld [vmem:[%s409_s0] sm:$0xff] }
   0xa   :  { %127 = vmatpush.bf16.msra.mxu0 %v287_v1  ;;  %v295_v13 = vld [vmem:[%s412_s3] ss:$0 sm:$0xff] }
   0xb   :  { %v296_v34 = vld [vmem:[%s414_s5] ss:$0 sm:$0xff] }
   0xc   :  { %v297_v35 = vld [vmem:[%s413_s4] ss:$0 sm:$0xff] }
   0xe   :  { %128 = vmatpush.bf16.msra.mxu0 %v286_v4 }
   0xf   :  { %158 = vperm.xlu0 %294, %v150_v5  }
  0x12   :  { %129 = vmatpush.bf16.msra.mxu0 %v285_v6 }
  0x16   :  { %130 = vmatpush.bf16.msra.mxu0 %v284_v7 }
  0x1a   :  { %131 = vmatpush.bf16.msra.mxu0 %v283_v8 }
  0x1e   :  { %132 = vmatpush.bf16.msra.mxu0 %v282_v9 }
  0x22   :  { %133 = vmatpush.bf16.msra.mxu0 %v281_v10 }
  0x25   :  { %134 = vmatmul.bf16.vlgmr.msra.gmra.mxu0 %v289_v11 }
  0x79   :  { %v154_v12 = vpop.permute.xlu0 %153 }
  0x81   :  { %v159_v18 = vpop.permute.xlu0 %158 }
  0xa2   :  { %v135_v14 = vpop.f32.mrf.mxu0 }
  0xa3   :  { %v161_v15 = vmul.f32 %v154_v12, %v135_v14 }
  0xa5   :  { %v167_v16 = vadd.f32 %v295_v13, %v161_v15 }
  0xa7   :  { %v279_v17 = vmul.f32 -1.442695, %v167_v16 }
  0xa9   :  { %298 = vpow2.f32 %v279_v17 }
  0xaa   :  { %v137_v19 = vpop.f32.mrf.mxu0 }
  0xab   :  { %v162_v20 = vmul.f32 %v159_v18, %v137_v19 }
  0xad   :  { %v168_v21 = vadd.f32 %v295_v13, %v162_v20 }
  0xaf   :  { %v299_v22 = vpop.eup %298  ;;  %v280_v23 = vmul.f32 -1.442695, %v168_v21 }
  0xb0   :  { %v175_v24 = vadd.f32 1.0, %v299_v22 }
  0xb1   :  { %300 = vpow2.f32 %v280_v23 }
  0xb2   :  { %302 = vrcp.f32 %v175_v24  ;;  %v188_v30 = vand.u32 2147483648, %v175_v24  ;;  %v186_v32 = vand.u32 2147483647, %v175_v24  ;;  %vm182_vm1 = vweird.f32 %v175_v24 }
  0xb4   :  { %v189_v37 = vor.u32 1.1754944e-38, %v188_v30  ;;  %vm187_vm3 = vcmp.eq.f32.partialorder %v186_v32, 8.507059e+37 }
  0xb7   :  { %v301_v25 = vpop.eup %300 }
  0xb8   :  { %v303_v26 = vpop.eup %302  ;;  %v176_v27 = vadd.f32 1.0, %v301_v25 }
  0xb9   :  { %v178_v28 = vmul.f32 %v303_v26, %v175_v24  ;;  %vm183_vm0 = vweird.f32 %v303_v26 }
  0xba   :  { %304 = vrcp.f32 %v176_v27  ;;  %vm184_vm2 = vmor %vm182_vm1, %vm183_vm0  ;;  %v203_v44 = vand.u32 2147483648, %v176_v27  ;;  %v201_v46 = vand.u32 2147483647, %v176_v27  ;;  %vm197_vm5 = vweird.f32 %v176_v27 }
  0xbb   :  { %v179_v29 = vsub.f32 1.0, %v178_v28 }
  0xbc   :  { %v204_v48 = vor.u32 1.1754944e-38, %v203_v44  ;;  %vm202_vm7 = vcmp.eq.f32.partialorder %v201_v46, 8.507059e+37 }
  0xbd   :  { %v180_v31 = vmul.f32 %v303_v26, %v179_v29 }
  0xbf   :  { %v181_v33 = vadd.f32 %v303_v26, %v180_v31 }
  0xc0   :  { %v305_v36 = vpop.eup %304 }
  0xc1   :  { %v185_v38 = vsel %vm184_vm2, %v303_v26, %v181_v33  ;;  %v193_v39 = vmul.f32 %v305_v36, %v176_v27  ;;  %vm198_vm4 = vweird.f32 %v305_v36 }
  0xc2   :  { %v190_v40 = vsel %vm187_vm3, %v189_v37, %v185_v38  ;;  %vm199_vm6 = vmor %vm197_vm5, %vm198_vm4 }
  0xc3   :  { %v224_v41 = vmul.f32 %v296_v34, %v190_v40  ;;  %v211_v42 = vmul.f32 %v297_v35, %v190_v40  ;;  %v194_v43 = vsub.f32 1.0, %v193_v39 }
  0xc5   :  { %226 = vadd.xlane.f32.xlu2 %v224_v41  ;;  %213 = vadd.xlane.f32.xlu1 %v211_v42  ;;  %v195_v45 = vmul.f32 %v305_v36, %v194_v43 }
  0xc7   :  { %v196_v47 = vadd.f32 %v305_v36, %v195_v45 }
  0xc9   :  { %v200_v49 = vsel %vm199_vm6, %v305_v36, %v196_v47 }
  0xca   :  { %v205_v50 = vsel %vm202_vm7, %v204_v48, %v200_v49 }
  0xcb   :  { %v225_v51 = vmul.f32 %v296_v34, %v205_v50  ;;  %v212_v52 = vmul.f32 %v297_v35, %v205_v50 }
  0xcd   :  { %228 = vadd.xlane.f32.xlu2 %v225_v51  ;;  %215 = vadd.xlane.f32.xlu1 %v212_v52 }
 0x138   :  { %v227_v53 = vpop.xlane.xlu2 %226  ;;  %v214_v54 = vpop.xlane.xlu1 %213 }
 0x139   :  { %230 = vst.msk [vmem:[%s416_s7] sm:$0xff] %vm217_vm8, %v227_v53 }
 0x13a   :  { %218 = vst.msk [vmem:[%s415_s6] sm:$0xff] %vm217_vm8, %v214_v54 }
 0x140   :  { %v229_v55 = vpop.xlane.xlu2 %228  ;;  %v216_v56 = vpop.xlane.xlu1 %215 }
 0x141   :  { %231 = vst.msk [vmem:[%s416_s7 + $0x8] sm:$0xff] %vm217_vm8, %v229_v55 }
 0x142   :  { %219 = vst.msk [vmem:[%s415_s6 + $0x8] sm:$0xff] %vm217_vm8, %v216_v56 }
 0x143   :  { %240 = vsyncpa [#allocation4], 1 }

</bundles_post_ra>
